<compile_context>
chip_gen: v5e
topology: v5e:2x2
jax: 0.10.0
libtpu: 0.0.40
codegen_flags: <defaults>
</compile_context>

<pallas_src>
import jax
import jax.numpy as jnp
from jax.experimental import pallas as pl
from jax.experimental.pallas import tpu as pltpu

LANE = 128
SUBLANE = 8
MAX_TILE_ROWS = 2048  # 2048 sublane rows * 128 lanes = 256K batch elems / tile


def moe2_kernel(params_ref, x_ref, o_ref):
    """params_ref: SMEM (9,) f32 scalar table
         [we00, we01, we10, we11, be0, be1, dwg0, dwg1, dbg]
         where dwg = wg[:,1]-wg[:,0], dbg = bg[1]-bg[0].
       x_ref: VMEM (2, tb_r, 128) f32  -- features on dim 0, batch packed
              across sublanes (tb_r) and lanes (128): fully dense vregs.
       o_ref: VMEM (tb_r, 128) f32     -- lane- and sublane-dense output tile.
    """
    x0 = x_ref[0]                      # (tb_r, 128)
    x1 = x_ref[1]                      # (tb_r, 128)

    we00 = params_ref[0]; we01 = params_ref[1]
    we10 = params_ref[2]; we11 = params_ref[3]
    be0 = params_ref[4]; be1 = params_ref[5]
    dw0 = params_ref[6]; dw1 = params_ref[7]; db = params_ref[8]

    # Gating: 2-way softmax needs only the logit difference ld = l1 - l0.
    # g0 = softmax(...)[:, 0] = sigmoid(l0 - l1) = 0.5 - 0.5*tanh(0.5*ld)
    ld = x0 * dw0 + x1 * dw1 + db
    g0 = 0.5 - 0.5 * jnp.tanh(0.5 * ld)

    # Experts (Linear(2, 1) each) as VPU broadcast MACs.
    e0 = x0 * we00 + x1 * we10 + be0
    e1 = x0 * we01 + x1 * we11 + be1

    # Weighted combine (g1 = 1 - g0 folded in) + sigmoid via tanh (one EUP op).
    y = e1 + g0 * (e0 - e1)
    o_ref[...] = 0.5 + 0.5 * jnp.tanh(0.5 * y)


def _round_up(a, b):
    return ((a + b - 1) // b) * b


def mixture_of_experts(x, wg, bg, we, be):
    """x: (B, 2) f32.
       wg/we: (2, 2) = nn.Linear.weight.T (pre-transposed); bg/be: (1,2) or (2,).
       Returns (B, 1) f32."""
    B, f_in = x.shape
    assert f_in == 2, f"expected 2 input features, got {f_in}"
    assert wg.shape == (2, 2) and we.shape == (2, 2), \
        "weights must be (F_IN, E) = nn.Linear.weight.T"
    bg = jnp.reshape(bg, (2,)).astype(jnp.float32)
    be = jnp.reshape(be, (2,)).astype(jnp.float32)
    wg = wg.astype(jnp.float32)
    we = we.astype(jnp.float32)

    # --- batch tiling: batch packed across sublanes (rows) and lanes (128) ---
    rows = _round_up(pl.cdiv(B, LANE), SUBLANE)          # sublane rows needed
    tb_r = min(MAX_TILE_ROWS, rows)
    if tb_r == rows and rows >= 2 * SUBLANE:
        # Enough work for >= 2 tiles: split so v7x megacore gets both TCs.
        tb_r = _round_up((rows + 1) // 2, SUBLANE)
    rows_p = _round_up(rows, tb_r)
    bp = rows_p * LANE
    grid = rows_p // tb_r

    # Feature-major, batch packed (2, rows_p, 128).  One pad+transpose pass.
    # TODO(synk): accept x already in (2, R, 128) layout from the producer to
    # drop this wrapper-side transpose pass at very large B.
    x_pk = jnp.pad(x.astype(jnp.float32), ((0, bp - B), (0, 0))) \
              .T.reshape(2, rows_p, LANE)

    # Scalar table: expert weights/biases + gate logit-difference params.
    params = jnp.concatenate([
        jnp.reshape(we, (-1,)),                 # we00, we01, we10, we11
        be,                                     # be0, be1
        wg[:, 1] - wg[:, 0],                    # dwg0, dwg1
        (bg[1] - bg[0])[None],                  # dbg
    ])                                          # (9,)

    grid_spec = pltpu.PrefetchScalarGridSpec(
        num_scalar_prefetch=1,
        grid=(grid,),
        in_specs=[pl.BlockSpec((2, tb_r, LANE), lambda i, params: (0, i, 0))],
        out_specs=pl.BlockSpec((tb_r, LANE), lambda i, params: (i, 0)),
    )

    out_pk = pl.pallas_call(
        moe2_kernel,
        out_shape=jax.ShapeDtypeStruct((rows_p, LANE), jnp.float32),
        grid_spec=grid_spec,
        compiler_params=pltpu.CompilerParams(
            dimension_semantics=("parallel",)),   # megacore split on v7x
    )(params, x_pk)

    return out_pk.reshape(bp)[:B].reshape(B, 1)


def reference(x, wg, bg, we, be):
    g = jax.nn.softmax(x @ wg + bg, axis=1)
    e = x @ we + be
    return jax.nn.sigmoid(jnp.sum(g * e, axis=-1, keepdims=True))


if __name__ == "__main__":
    E = 2            # num_experts (module default)
    F_IN = 2         # fixed by nn.Linear(2, ...)

    key = jax.random.PRNGKey(0)
    kx, kwg, kbg, kwe, kbe = jax.random.split(key, 5)

    # Synthetic checkpoint, pre-transposed for x @ W (same math as nn.Linear).
    wg = jax.random.normal(kwg, (F_IN, E), dtype=jnp.float32) * 0.5
    bg = jax.random.normal(kbg, (1, E), dtype=jnp.float32) * 0.1
    we = jax.random.normal(kwe, (F_IN, E), dtype=jnp.float32) * 0.5
    be = jax.random.normal(kbe, (1, E), dtype=jnp.float32) * 0.1

    ok = True
    # B=8: single (8,128) tile with padding; B=600: lane+sublane padding path;
    # B=5000: rows >= 16 -> two tiles (exercises the grid / megacore split).
    for B in (8, 600, 5000):
        kb = jax.random.fold_in(kx, B)
        x = jax.random.normal(kb, (B, F_IN), dtype=jnp.float32)

        out = mixture_of_experts(x, wg, bg, we, be)
        out = jax.block_until_ready(out)
        ref = reference(x, wg, bg, we, be)

        assert out.shape == (B, 1)
        # Exact math (tanh-based sigmoids, no approx reciprocal) -> tight tol.
        ok &= bool(jnp.allclose(out, ref, atol=1e-5, rtol=1e-5))

    assert ok
    print("KERNEL_OK")
</pallas_src>

<mosaic_0001>
module attributes {stable_mosaic.version = 11 : i64} {
  func.func @moe2_kernel(%arg0: i32, %arg1: memref<9xf32, #tpu.memory_space<smem>>, %arg2: memref<2x8x128xf32, #tpu.memory_space<vmem>>, %arg3: memref<8x128xf32, #tpu.memory_space<vmem>>) attributes {dimension_semantics = [#tpu.dimension_semantics<parallel>], iteration_bounds = array<i64: 1>, scalar_prefetch = 1 : i64, scratch_operands = 0 : i64, tpu.core_type = #tpu.core_type<tc>, window_params = [{transform_indices = @transform_0, window_bounds = array<i64: 2, 8, 128>}, {transform_indices = @transform_1, window_bounds = array<i64: 8, 128>}]} {
    %c0 = arith.constant 0 : index
    %c0_0 = arith.constant 0 : index
    %c0_1 = arith.constant 0 : index
    %0 = vector.load %arg2[%c0, %c0_0, %c0_1] : memref<2x8x128xf32, #tpu.memory_space<vmem>>, vector<1x8x128xf32>
    %1 = vector.shape_cast %0 : vector<1x8x128xf32> to vector<8x128xf32>
    %c1 = arith.constant 1 : index
    %c0_2 = arith.constant 0 : index
    %c0_3 = arith.constant 0 : index
    %2 = vector.load %arg2[%c1, %c0_2, %c0_3] : memref<2x8x128xf32, #tpu.memory_space<vmem>>, vector<1x8x128xf32>
    %3 = vector.shape_cast %2 : vector<1x8x128xf32> to vector<8x128xf32>
    %c0_4 = arith.constant 0 : index
    %4 = memref.load %arg1[%c0_4] : memref<9xf32, #tpu.memory_space<smem>>
    %c1_5 = arith.constant 1 : index
    %5 = memref.load %arg1[%c1_5] : memref<9xf32, #tpu.memory_space<smem>>
    %c2 = arith.constant 2 : index
    %6 = memref.load %arg1[%c2] : memref<9xf32, #tpu.memory_space<smem>>
    %c3 = arith.constant 3 : index
    %7 = memref.load %arg1[%c3] : memref<9xf32, #tpu.memory_space<smem>>
    %c4 = arith.constant 4 : index
    %8 = memref.load %arg1[%c4] : memref<9xf32, #tpu.memory_space<smem>>
    %c5 = arith.constant 5 : index
    %9 = memref.load %arg1[%c5] : memref<9xf32, #tpu.memory_space<smem>>
    %c6 = arith.constant 6 : index
    %10 = memref.load %arg1[%c6] : memref<9xf32, #tpu.memory_space<smem>>
    %c7 = arith.constant 7 : index
    %11 = memref.load %arg1[%c7] : memref<9xf32, #tpu.memory_space<smem>>
    %c8 = arith.constant 8 : index
    %12 = memref.load %arg1[%c8] : memref<9xf32, #tpu.memory_space<smem>>
    %13 = vector.broadcast %10 : f32 to vector<8x128xf32>
    %14 = arith.mulf %1, %13 : vector<8x128xf32>
    %15 = vector.broadcast %11 : f32 to vector<8x128xf32>
    %16 = arith.mulf %3, %15 : vector<8x128xf32>
    %17 = arith.addf %14, %16 : vector<8x128xf32>
    %18 = vector.broadcast %12 : f32 to vector<8x128xf32>
    %19 = arith.addf %17, %18 : vector<8x128xf32>
    %cst = arith.constant 5.000000e-01 : f32
    %20 = vector.broadcast %cst : f32 to vector<8x128xf32>
    %21 = arith.mulf %20, %19 : vector<8x128xf32>
    %22 = math.tanh %21 : vector<8x128xf32>
    %cst_6 = arith.constant 5.000000e-01 : f32
    %23 = vector.broadcast %cst_6 : f32 to vector<8x128xf32>
    %24 = arith.mulf %23, %22 : vector<8x128xf32>
    %cst_7 = arith.constant 5.000000e-01 : f32
    %25 = vector.broadcast %cst_7 : f32 to vector<8x128xf32>
    %26 = arith.subf %25, %24 : vector<8x128xf32>
    %27 = vector.broadcast %4 : f32 to vector<8x128xf32>
    %28 = arith.mulf %1, %27 : vector<8x128xf32>
    %29 = vector.broadcast %6 : f32 to vector<8x128xf32>
    %30 = arith.mulf %3, %29 : vector<8x128xf32>
    %31 = arith.addf %28, %30 : vector<8x128xf32>
    %32 = vector.broadcast %8 : f32 to vector<8x128xf32>
    %33 = arith.addf %31, %32 : vector<8x128xf32>
    %34 = vector.broadcast %5 : f32 to vector<8x128xf32>
    %35 = arith.mulf %1, %34 : vector<8x128xf32>
    %36 = vector.broadcast %7 : f32 to vector<8x128xf32>
    %37 = arith.mulf %3, %36 : vector<8x128xf32>
    %38 = arith.addf %35, %37 : vector<8x128xf32>
    %39 = vector.broadcast %9 : f32 to vector<8x128xf32>
    %40 = arith.addf %38, %39 : vector<8x128xf32>
    %41 = arith.subf %33, %40 : vector<8x128xf32>
    %42 = arith.mulf %26, %41 : vector<8x128xf32>
    %43 = arith.addf %40, %42 : vector<8x128xf32>
    %cst_8 = arith.constant 5.000000e-01 : f32
    %44 = vector.broadcast %cst_8 : f32 to vector<8x128xf32>
    %45 = arith.mulf %44, %43 : vector<8x128xf32>
    %46 = math.tanh %45 : vector<8x128xf32>
    %cst_9 = arith.constant 5.000000e-01 : f32
    %47 = vector.broadcast %cst_9 : f32 to vector<8x128xf32>
    %48 = arith.mulf %47, %46 : vector<8x128xf32>
    %cst_10 = arith.constant 5.000000e-01 : f32
    %49 = vector.broadcast %cst_10 : f32 to vector<8x128xf32>
    %50 = arith.addf %49, %48 : vector<8x128xf32>
    %c0_11 = arith.constant 0 : index
    %c0_12 = arith.constant 0 : index
    %51 = vector.load %arg3[%c0_11, %c0_12] : memref<8x128xf32, #tpu.memory_space<vmem>>, vector<8x128xf32>
    tpu.vector_store %arg3[%c0_11, %c0_12], %50 {strides = array<i32>} : memref<8x128xf32, #tpu.memory_space<vmem>>, vector<8x128xf32>,
    return
  }
  func.func @transform_0(%arg0: i32, %arg1: memref<9xf32, #tpu.memory_space<smem>>) -> (i32, i32, i32) {
    %c0_i32 = arith.constant 0 : i32
    %c0_i32_0 = arith.constant 0 : i32
    %c0_i32_1 = arith.constant 0 : i32
    return %c0_i32, %arg0, %c0_i32_0 : i32, i32, i32
  }
  func.func @transform_1(%arg0: i32, %arg1: memref<9xf32, #tpu.memory_space<smem>>) -> (i32, i32) {
    %c0_i32 = arith.constant 0 : i32
    %c0_i32_0 = arith.constant 0 : i32
    return %arg0, %c0_i32 : i32, i32
  }
}

</mosaic_0001>

<bundles_post_ra>
// kernel: tpu_custom_call.1
= control target key start
LH: loop header
LB: loop body
LE: loop exit
PB: predicated region body
PF: predicated region fallthrough
CT: control target
= control target key end

     0   :  { %s179_s12 = smov [#allocation3]   ;;  %s208_s0 = inlined_call_operand.hbm [shape: f32[9], index: 0, kind: input, shape index: {}]   ;;  %s209_s1 = inlined_call_operand.hbm [shape: f32[2,8,128], index: 1, kind: input, shape index: {}]   ;;  %s210_s2 = inlined_call_operand.hbm [shape: f32[8,128], index: 2, kind: output, shape index: {}]  }
   0x1   :  { %s8_s11 = sshll.u32 %s208_s0, 4  ;;  %s9_s11 = int_to_ptr.hbm [resolvable:$true] %s8_s11 }
   0x2   :  { %11 = dma.hbm_to_smem %s9_s11, 16, %s179_s12, [#allocation2] }
   0x3   :  { %173 = dma.done.wait [#allocation2], 16 }
   0x4   :  { %174 = vsyncadd [#allocation2], 4294967280 }
   0x5   :  { %14 = sfence }
   0x6   :  { %15 = vsyncpa [#allocation5], 0 }
   0x7   :  { %16 = vsyncpa [#allocation6], 0  ;;  %s21_s15 = sshll.u32 %s209_s1, 4  ;;  %s180_s16 = smov [#allocation4]   ;;  %s22_s15 = int_to_ptr.hbm [resolvable:$true] %s21_s15 }
   0x8   :  { %s23_s17 = sshll.u32 %s180_s16, 4  ;;  %s181_s18 = smov 128   ;;  %s24_s17 = int_to_ptr.vmem [resolvable:$true] %s23_s17 }
   0x9   :  { %s182_s19 = smov 8  }
   0xa   :  { %29 = dma.hbm_to_vmem [thread:$0]  %s22_s15, 256, %s24_s17, [#allocation5], %s181_s18, %s181_s18, %s182_s19  }
   0xb   :  { %175 = dma.done.wait [#allocation5], 256  }
   0xc   :  { %176 = vsyncadd [#allocation5], 4294967040  ;;  %s37_s0 = sld [smem:[#allocation3]]  ;;  %v34_v0 = vld [vmem:[#allocation4] sm:$0xff]  ;;  %v36_v1 = vld [vmem:[#allocation4 + $0x8] sm:$0xff]  ;;  %s183_s27 = smov [#allocation7]  }
   0xd   :  { %s96_s20 = sld [smem:[#allocation3 + $0x1]]  ;;  %s84_s28 = sshll.u32 %s183_s27, 4  ;;  %s85_s28 = int_to_ptr.vmem [resolvable:$true] %s84_s28 }
   0xe   :  { %s97_s21 = sld [smem:[#allocation3 + $0x2]]  ;;  %s86_s3 = sshll.u32 %s210_s2, 4  ;;  %s87_s3 = int_to_ptr.hbm [resolvable:$true] %s86_s3 }
   0xf   :  { %s98_s22 = sld [smem:[#allocation3 + $0x3]] }
  0x10   :  { %s101_s23 = sld [smem:[#allocation3 + $0x6]] }
  0x11   :  { %s102_s24 = sld [smem:[#allocation3 + $0x7]] }
  0x12   :  { %s103_s25 = sld [smem:[#allocation3 + $0x8]]  ;;  %v57_v5 = vstv %s37_s0 }
  0x13   :  { %s99_s1 = sld [smem:[#allocation3 + $0x4]]  ;;  %v64_v8 = vstv %s96_s20  ;;  %v58_v12 = vmul.f32 %v57_v5, %v34_v0 }
  0x14   :  { %s100_s26 = sld [smem:[#allocation3 + $0x5]]  ;;  %v59_v7 = vstv %s97_s21  ;;  %v65_v14 = vmul.f32 %v64_v8, %v34_v0 }
  0x15   :  { %v66_v9 = vstv %s98_s22  ;;  %v60_v13 = vmul.f32 %v59_v7, %v36_v1 }
  0x16   :  { %v46_v2 = vstv %s101_s23  ;;  %v67_v15 = vmul.f32 %v66_v9, %v36_v1 }
  0x17   :  { %v47_v3 = vmul.f32 %v46_v2, %v34_v0  ;;  %v48_v4 = vstv %s102_s24  ;;  %v61_v18 = vadd.f32 %v60_v13, %v58_v12 }
  0x18   :  { %v49_v6 = vmul.f32 %v48_v4, %v36_v1  ;;  %v51_v10 = vstv %s103_s25  ;;  %v68_v19 = vadd.f32 %v67_v15, %v65_v14 }
  0x19   :  { %v62_v20 = vstv %s99_s1 }
  0x1a   :  { %v50_v11 = vadd.f32 %v49_v6, %v47_v3  ;;  %v69_v21 = vstv %s100_s26  ;;  %v63_v22 = vadd.f32 %v62_v20, %v61_v18 }
  0x1b   :  { %v70_v23 = vadd.f32 %v69_v21, %v68_v19 }
  0x1c   :  { %v52_v16 = vadd.f32 %v51_v10, %v50_v11 }
  0x1d   :  { %v71_v26 = vsub.f32 %v63_v22, %v70_v23 }
  0x1e   :  { %v53_v17 = vmul.f32 0.5, %v52_v16 }
  0x20   :  { %109 = vtanh.f32 %v53_v17 }
  0x26   :  { %v110_v24 = vpop.eup %109 }
  0x27   :  { %v55_v25 = vmul.f32 0.5, %v110_v24 }
  0x29   :  { %v56_v27 = vsub.f32 0.5, %v55_v25 }
  0x2b   :  { %v72_v28 = vmul.f32 %v71_v26, %v56_v27 }
  0x2d   :  { %v73_v29 = vadd.f32 %v72_v28, %v70_v23 }
  0x2f   :  { %v74_v30 = vmul.f32 0.5, %v73_v29 }
  0x31   :  { %111 = vtanh.f32 %v74_v30 }
  0x37   :  { %v112_v31 = vpop.eup %111 }
  0x38   :  { %v76_v32 = vmul.f32 0.5, %v112_v31 }
  0x3a   :  { %v77_v33 = vadd.f32 0.5, %v76_v32 }
  0x3c   :  { %78 = vst [vmem:[#allocation7] sm:$0xff] %v77_v33 }
  0x3d   :  { %89 = dma.vmem_to_hbm [thread:$0]  %s85_s28, 128, %s87_s3, [#allocation6]  }
  0x3e   :  { %177 = dma.done.wait [#allocation6], 128  }
  0x3f   :  { %178 = vsyncadd [#allocation6], 4294967168 }
  0x40   :  { %94 = vsyncpa [#allocation5], 1 }
  0x41   :  { %95 = vsyncpa [#allocation6], 1 }

</bundles_post_ra>
